<compile_context>
chip_gen: v5e
topology: v5e:2x2
jax: 0.10.0
libtpu: 0.0.40
codegen_flags: <defaults>
</compile_context>

<pallas_src>
import jax
import jax.numpy as jnp
from jax.experimental import pallas as pl
from jax.experimental.pallas import tpu as pltpu

# deterministic ground-truth-style parameters from the reference script
W_LIST = [2.0, -3.4, 7.0, 7.0, 8.0]
BIAS = 4.2
INPUT_DIM = len(W_LIST)  # 5

_LANES = 128           # TPU lane width
_MAX_TILE_B = 4096     # batch elements per grid step (lane-dense columns)


def _round_up(n, m):
    return ((n + m - 1) // m) * m


def linear_kernel(w_ref, b_ref, x_ref, o_ref):
    """Pure-VPU linear layer over a lane-dense batch tile.

    w_ref: (D,)  float32 in SMEM   (nn.Linear weight, flattened)
    b_ref: (1,)  float32 in SMEM   (nn.Linear bias)
    x_ref: (D, TILE_B) float32 in VMEM  (features on sublanes, batch on lanes)
    o_ref: (1, TILE_B) float32 in VMEM  (lane-dense output row)
    """
    d_total = x_ref.shape[0]  # static (= 5)
    # acc = sum_d w[d] * x[d, :]  -- unrolled chain of VPU multiply-adds,
    # no MXU, no cross-lane reduction.
    acc = w_ref[0] * x_ref[0:1, :]
    for d in range(1, d_total):
        acc = acc + w_ref[d] * x_ref[d:d + 1, :]
    o_ref[...] = acc + b_ref[0]


def linear_regression_forward(x, weight, bias, max_tile_b=_MAX_TILE_B):
    """Equivalent of nn.Linear(input_dim, 1): y = x @ W.T + b.

    Args:
      x:      (B, D) float32
      weight: (1, D) float32   (PyTorch nn.Linear weight layout)
      bias:   (1,)   float32
    Returns:
      (B, 1) float32
    """
    B, D = x.shape

    # Pick a lane-aligned tile and pad the batch so TILE_B | B_pad.
    b_pad = _round_up(B, _LANES)
    if b_pad <= max_tile_b:
        tile_b = b_pad
    else:
        tile_b = max_tile_b
        b_pad = _round_up(b_pad, tile_b)

    # One-time wrapper-side relayout: batch onto the lane axis.
    x_t = x.T  # (D, B)
    if b_pad != B:
        x_t = jnp.pad(x_t, ((0, 0), (0, b_pad - B)))

    w_vec = weight.reshape(D).astype(jnp.float32)   # (D,)  -> SMEM scalars
    b_vec = bias.reshape(1).astype(jnp.float32)     # (1,)  -> SMEM scalar

    grid = (b_pad // tile_b,)

    out_row = pl.pallas_call(
        linear_kernel,
        out_shape=jax.ShapeDtypeStruct((1, b_pad), jnp.float32),
        grid=grid,
        in_specs=[
            pl.BlockSpec(memory_space=pltpu.MemorySpace.SMEM),     # weight
            pl.BlockSpec(memory_space=pltpu.MemorySpace.SMEM),     # bias
            pl.BlockSpec((D, tile_b), lambda i: (0, i)),            # x (D, TILE_B)
        ],
        out_specs=pl.BlockSpec((1, tile_b), lambda i: (0, i)),      # lane-dense out
        compiler_params=pltpu.CompilerParams(
            dimension_semantics=("parallel",),                      # v7x: 2 TCs
        ),
    )(w_vec, b_vec, x_t)

    return out_row[0, :B].reshape(B, 1)


if __name__ == "__main__":
    key = jax.random.PRNGKey(0)

    # deterministic parameters (shapes match nn.Linear(input_dim, 1))
    weight = jnp.asarray(W_LIST, dtype=jnp.float32).reshape(1, INPUT_DIM)
    bias = jnp.asarray([BIAS], dtype=jnp.float32)

    # small case consistent with the module's forward
    B = 8
    x = jax.random.normal(key, (B, INPUT_DIM), dtype=jnp.float32)
    out = linear_regression_forward(x, weight, bias)
    out = jax.block_until_ready(out)
    ref = x @ weight.T + bias
    assert out.shape == (B, 1)
    assert jnp.allclose(out, ref, atol=1e-5), (out, ref)

    # larger batch exercising the multi-tile, padded, parallel-grid path
    B2 = 5000
    x2 = jax.random.normal(jax.random.PRNGKey(1), (B2, INPUT_DIM), dtype=jnp.float32)
    out2 = jax.block_until_ready(linear_regression_forward(x2, weight, bias))
    ref2 = x2 @ weight.T + bias
    assert out2.shape == (B2, 1)
    assert jnp.allclose(out2, ref2, atol=1e-4), "large-batch mismatch"

    print("KERNEL_OK")
</pallas_src>

<mosaic_0001>
module attributes {stable_mosaic.version = 11 : i64} {
  func.func @linear_kernel(%arg0: i32, %arg1: memref<5xf32, #tpu.memory_space<smem>>, %arg2: memref<1xf32, #tpu.memory_space<smem>>, %arg3: memref<5x128xf32, #tpu.memory_space<vmem>>, %arg4: memref<1x128xf32, #tpu.memory_space<vmem>>) attributes {dimension_semantics = [#tpu.dimension_semantics<parallel>], iteration_bounds = array<i64: 1>, scalar_prefetch = 0 : i64, scratch_operands = 0 : i64, tpu.core_type = #tpu.core_type<tc>, window_params = [{transform_indices = @transform_0, window_bounds = array<i64: 5>}, {transform_indices = @transform_1, window_bounds = array<i64: 1>}, {transform_indices = @transform_2, window_bounds = array<i64: 5, 128>}, {transform_indices = @transform_3, window_bounds = array<i64: 1, 128>}]} {
    %c0 = arith.constant 0 : index
    %0 = memref.load %arg1[%c0] : memref<5xf32, #tpu.memory_space<smem>>
    %c0_0 = arith.constant 0 : index
    %c0_1 = arith.constant 0 : index
    %1 = vector.load %arg3[%c0_0, %c0_1] : memref<5x128xf32, #tpu.memory_space<vmem>>, vector<1x128xf32>
    %2 = vector.broadcast %0 : f32 to vector<1x128xf32>
    %3 = arith.mulf %2, %1 : vector<1x128xf32>
    %c1 = arith.constant 1 : index
    %4 = memref.load %arg1[%c1] : memref<5xf32, #tpu.memory_space<smem>>
    %c1_2 = arith.constant 1 : index
    %c0_3 = arith.constant 0 : index
    %5 = vector.load %arg3[%c1_2, %c0_3] : memref<5x128xf32, #tpu.memory_space<vmem>>, vector<1x128xf32>
    %6 = vector.broadcast %4 : f32 to vector<1x128xf32>
    %7 = arith.mulf %6, %5 : vector<1x128xf32>
    %8 = arith.addf %3, %7 : vector<1x128xf32>
    %c2 = arith.constant 2 : index
    %9 = memref.load %arg1[%c2] : memref<5xf32, #tpu.memory_space<smem>>
    %c2_4 = arith.constant 2 : index
    %c0_5 = arith.constant 0 : index
    %10 = vector.load %arg3[%c2_4, %c0_5] : memref<5x128xf32, #tpu.memory_space<vmem>>, vector<1x128xf32>
    %11 = vector.broadcast %9 : f32 to vector<1x128xf32>
    %12 = arith.mulf %11, %10 : vector<1x128xf32>
    %13 = arith.addf %8, %12 : vector<1x128xf32>
    %c3 = arith.constant 3 : index
    %14 = memref.load %arg1[%c3] : memref<5xf32, #tpu.memory_space<smem>>
    %c3_6 = arith.constant 3 : index
    %c0_7 = arith.constant 0 : index
    %15 = vector.load %arg3[%c3_6, %c0_7] : memref<5x128xf32, #tpu.memory_space<vmem>>, vector<1x128xf32>
    %16 = vector.broadcast %14 : f32 to vector<1x128xf32>
    %17 = arith.mulf %16, %15 : vector<1x128xf32>
    %18 = arith.addf %13, %17 : vector<1x128xf32>
    %c4 = arith.constant 4 : index
    %19 = memref.load %arg1[%c4] : memref<5xf32, #tpu.memory_space<smem>>
    %c4_8 = arith.constant 4 : index
    %c0_9 = arith.constant 0 : index
    %20 = vector.load %arg3[%c4_8, %c0_9] : memref<5x128xf32, #tpu.memory_space<vmem>>, vector<1x128xf32>
    %21 = vector.broadcast %19 : f32 to vector<1x128xf32>
    %22 = arith.mulf %21, %20 : vector<1x128xf32>
    %23 = arith.addf %18, %22 : vector<1x128xf32>
    %c0_10 = arith.constant 0 : index
    %24 = memref.load %arg2[%c0_10] : memref<1xf32, #tpu.memory_space<smem>>
    %25 = vector.broadcast %24 : f32 to vector<1x128xf32>
    %26 = arith.addf %23, %25 : vector<1x128xf32>
    %c0_11 = arith.constant 0 : index
    %c0_12 = arith.constant 0 : index
    %27 = vector.load %arg4[%c0_11, %c0_12] : memref<1x128xf32, #tpu.memory_space<vmem>>, vector<1x128xf32>
    tpu.vector_store %arg4[%c0_11, %c0_12], %26 {strides = array<i32>} : memref<1x128xf32, #tpu.memory_space<vmem>>, vector<1x128xf32>,
    return
  }
  func.func @transform_0(%arg0: i32) -> i32 {
    %c0_i32 = arith.constant 0 : i32
    %c0_i32_0 = arith.constant 0 : i32
    return %c0_i32 : i32
  }
  func.func @transform_1(%arg0: i32) -> i32 {
    %c0_i32 = arith.constant 0 : i32
    %c0_i32_0 = arith.constant 0 : i32
    return %c0_i32 : i32
  }
  func.func @transform_2(%arg0: i32) -> (i32, i32) {
    %c0_i32 = arith.constant 0 : i32
    %c0_i32_0 = arith.constant 0 : i32
    return %c0_i32, %arg0 : i32, i32
  }
  func.func @transform_3(%arg0: i32) -> (i32, i32) {
    %c0_i32 = arith.constant 0 : i32
    %c0_i32_0 = arith.constant 0 : i32
    return %c0_i32, %arg0 : i32, i32
  }
}

</mosaic_0001>

<bundles_post_ra>
// kernel: tpu_custom_call.1
= control target key start
LH: loop header
LB: loop body
LE: loop exit
PB: predicated region body
PF: predicated region fallthrough
CT: control target
= control target key end

     0   :  { %9 = vsyncpa [#allocation6], 0  ;;  %s197_s0 = inlined_call_operand.vmem [shape: f32[5], index: 0, kind: input, shape index: {}]   ;;  %s198_s1 = inlined_call_operand.<no memory space> [shape: f32[1], index: 1, kind: input, shape index: {}]   ;;  %s199_s2 = inlined_call_operand.hbm [shape: f32[5,128], index: 2, kind: input, shape index: {}]   ;;  %s200_s3 = inlined_call_operand.hbm [shape: f32[1,128], index: 3, kind: output, shape index: {}]  }
   0x1   :  { %10 = vsyncpa [#allocation4], 0 }
   0x2   :  { %11 = vsyncpa [#allocation5], 0  ;;  %s17_s14 = sshll.u32 %s197_s0, 4  ;;  %s28_s17 = sshll.u32 %s199_s2, 4  ;;  %s18_s14 = int_to_ptr.vmem [resolvable:$true] %s17_s14  ;;  %s29_s17 = int_to_ptr.hbm [resolvable:$true] %s28_s17 }
   0x3   :  { %s162_s18 = smov [#allocation3]   ;;  %s163_s19 = smov [#allocation7]  }
   0x4   :  { %20 = dma.vmem_to_smem %s18_s14, 16, %s162_s18, [#allocation6]  }
   0x5   :  { %s30_s20 = sshll.u32 %s163_s19, 4  ;;  %s31_s20 = int_to_ptr.vmem [resolvable:$true] %s30_s20 }
   0x6   :  { %33 = dma.hbm_to_vmem [thread:$0]  %s29_s17, 128, %s31_s20, [#allocation4]  }
   0x7   :  { %156 = dma.done.wait [#allocation6], 16  }
   0x8   :  { %157 = vsyncadd [#allocation6], 4294967280 }
   0x9   :  { %158 = dma.done.wait [#allocation4], 128  }
   0xa   :  { %159 = vsyncadd [#allocation4], 4294967168 }
   0xb   :  { %42 = sfence }
   0xc   :  { %s43_s21 = sld [smem:[#allocation3]]  ;;  %v44_v0 = vld [vmem:[#allocation7] sm:$0x1]  ;;  %v48_v1 = vld [vmem:[#allocation7 + $0x1] sm:$0x1]  ;;  %v68_v18 = vstv %s198_s1  ;;  %s164_s26 = smov [#allocation8]  }
   0xd   :  { %s89_s22 = sld [smem:[#allocation3 + $0x1]]  ;;  %v53_v3 = vld [vmem:[#allocation7 + $0x2] sm:$0x1]  ;;  %v58_v6 = vld [vmem:[#allocation7 + $0x3] sm:$0x1]  ;;  %s76_s27 = sshll.u32 %s164_s26, 4  ;;  %s77_s27 = int_to_ptr.vmem [resolvable:$true] %s76_s27 }
   0xe   :  { %s90_s0 = sld [smem:[#allocation3 + $0x2]]  ;;  %v63_v11 = vld [vmem:[#allocation7 + $0x4] sm:$0x1]  ;;  %s78_s30 = sshll.u32 %s200_s3, 4  ;;  %s79_s30 = int_to_ptr.hbm [resolvable:$true] %s78_s30 }
   0xf   :  { %s91_s23 = sld [smem:[#allocation3 + $0x3]] }
  0x10   :  { %s92_s24 = sld [smem:[#allocation3 + $0x4]] }
  0x12   :  { %v45_v2 = vstv %s43_s21 }
  0x13   :  { %v46_v4 = vmul.f32 %v45_v2, %v44_v0  ;;  %v49_v5 = vstv %s89_s22 }
  0x14   :  { %v50_v7 = vmul.f32 %v49_v5, %v48_v1  ;;  %v54_v8 = vstv %s90_s0 }
  0x15   :  { %v55_v9 = vmul.f32 %v54_v8, %v53_v3  ;;  %v59_v10 = vstv %s91_s23 }
  0x16   :  { %v51_v12 = vadd.f32 %v50_v7, %v46_v4  ;;  %v60_v13 = vmul.f32 %v59_v10, %v58_v6  ;;  %v64_v14 = vstv %s92_s24 }
  0x17   :  { %v65_v16 = vmul.f32 %v64_v14, %v63_v11 }
  0x18   :  { %v56_v15 = vadd.f32 %v55_v9, %v51_v12 }
  0x1a   :  { %v61_v17 = vadd.f32 %v60_v13, %v56_v15 }
  0x1c   :  { %v66_v19 = vadd.f32 %v65_v16, %v61_v17 }
  0x1e   :  { %v69_v20 = vadd.f32 %v68_v18, %v66_v19 }
  0x20   :  { %70 = vst [vmem:[#allocation8] sm:$0x1] %v69_v20 }
  0x21   :  { %81 = dma.vmem_to_hbm [thread:$0]  %s77_s27, 16, %s79_s30, [#allocation5]  }
  0x22   :  { %160 = dma.done.wait [#allocation5], 16  }
  0x23   :  { %161 = vsyncadd [#allocation5], 4294967280 }
  0x24   :  { %86 = vsyncpa [#allocation4], 1 }
  0x25   :  { %87 = vsyncpa [#allocation5], 1 }
  0x26   :  { %88 = vsyncpa [#allocation6], 1 }

</bundles_post_ra>
